<compile_context>
chip_gen: v6e
topology: v6e:2x2x1
jax: 0.10.0
libtpu: 0.0.40
codegen_flags: <defaults>
</compile_context>

<pallas_src>
import functools
import math

import jax
import jax.numpy as jnp
import numpy as np
from jax.experimental import pallas as pl
from jax.experimental.pallas import tpu as pltpu


def _round_up(x, m):
    return ((x + m - 1) // m) * m


# ----------------------------- Pallas kernel -------------------------------

def _unpool_kernel(x_ref, w_ref, o_ref, acc_ref, *, mode):
    """x_ref:  (TILE_R, TILE_K)           input slab tile (native dtype)
       w_ref:  (n_sel, TILE_K, TILE_N)    selection matrices (native dtype)
       o_ref:  (TILE_R, TILE_N)           output tile
       acc_ref:(n_sel, TILE_R, TILE_N)    f32 accumulator scratch (resident over k)
    """
    k = pl.program_id(2)

    @pl.when(k == 0)
    def _():
        acc_ref[...] = jnp.zeros_like(acc_ref)

    x = x_ref[...]                                   # keep native dtype (bf16 stays bf16)
    n_sel = w_ref.shape[0]
    for s in range(n_sel):                           # static: 1 (avg/rand) or 2 (max)
        acc_ref[s] += jnp.dot(x, w_ref[s], preferred_element_type=jnp.float32)

    @pl.when(k == pl.num_programs(2) - 1)
    def _():
        if mode == "max":
            out = jnp.maximum(acc_ref[0], acc_ref[1])
        else:                                        # 'avg' (0.5-weights fused) / 'rand'
            out = acc_ref[0]
        o_ref[...] = out.astype(o_ref.dtype)


# ------------------------------- wrapper ------------------------------------

def so3_spatial_unpool(x, index, *, expansion="avg", kernel_size=2, key=None,
                       tile_r=256, tile_n=None, max_tile_k=1024):
    """Pallas implementation of SO3SpatialUnpool.forward.

    x:     (..., V_in) float array.
    index: (N_out, 2) int array of gather indices into the last axis of x.
    """
    if expansion not in ("avg", "max", "rand"):
        raise ValueError(f"{expansion} is not a valid value for expansion")
    if kernel_size == 1:                 # shortcut branch of the module
        return x

    lead = x.shape[:-1]
    M = x.shape[-1]
    x2 = x.reshape(-1, M)
    R = x2.shape[0]
    N, K = index.shape
    assert K == 2

    # ---------------- tile sizes (lane-dense output, MXU-friendly) ----------
    TILE_R = min(tile_r, _round_up(R, 8))
    TILE_N = tile_n if tile_n is not None else (256 if N >= 256 else 128)
    N_pad = _round_up(N, TILE_N)
    R_pad = _round_up(R, TILE_R)
    if M <= max_tile_k:                  # small contraction: single K step, no M padding
        TILE_K, M_pad = M, M
    else:                                # fine icosahedron levels: K-tile the contraction
        TILE_K = 512
        M_pad = _round_up(M, TILE_K)

    # ------------- index table (pad extra output columns with a valid 0) ----
    idx = index.astype(jnp.int32)
    if N_pad != N:
        idx = jnp.concatenate([idx, jnp.zeros((N_pad - N, 2), jnp.int32)], axis=0)

    # ------------- precompute selection matrices ({0, 0.5, 1} exact) --------
    # NOTE: in the real layer this is built once at __init__ time from the
    # fixed expansion table; it stays resident across the R grid axis.
    wdt = x.dtype
    m_iota = jnp.arange(M_pad, dtype=jnp.int32)[:, None]              # (M_pad, 1)
    oh0 = m_iota == idx[:, 0][None, :]                                # (M_pad, N_pad)
    oh1 = m_iota == idx[:, 1][None, :]
    if expansion == "avg":
        # fused: one weighted matmul instead of two + epilogue
        w = ((oh0.astype(jnp.float32) + oh1.astype(jnp.float32)) * 0.5
             ).astype(wdt)[None]                                      # (1, M_pad, N_pad)
        mode = "sum"
    elif expansion == "rand":
        assert key is not None, "expansion='rand' requires a PRNG key"
        k_sel = jax.random.randint(key, (N,), 0, K)
        sel = jnp.take_along_axis(index.astype(jnp.int32),
                                  k_sel[:, None], axis=1)[:, 0]
        if N_pad != N:
            sel = jnp.concatenate([sel, jnp.zeros((N_pad - N,), jnp.int32)])
        w = (m_iota == sel[None, :]).astype(wdt)[None]                # (1, M_pad, N_pad)
        mode = "sum"
    else:  # 'max'
        w = jnp.stack([oh0, oh1]).astype(wdt)                         # (2, M_pad, N_pad)
        mode = "max"
    n_sel = w.shape[0]

    # ---------------- pad the flattened input slab --------------------------
    if R_pad != R or M_pad != M:
        x2 = jnp.pad(x2, ((0, R_pad - R), (0, M_pad - M)))

    grid = (R_pad // TILE_R, N_pad // TILE_N, M_pad // TILE_K)

    itemsize = jnp.dtype(x.dtype).itemsize
    vmem_bytes = int(
        2 * TILE_R * TILE_K * itemsize                 # double-buffered x tile
        + 2 * n_sel * TILE_K * TILE_N * itemsize       # double-buffered W tile
        + 2 * TILE_R * TILE_N * itemsize               # double-buffered out tile
        + n_sel * TILE_R * TILE_N * 4)                 # f32 accumulator scratch
    vmem_limit = int(min(max(2 * vmem_bytes, 32 << 20), 64 << 20))  # safe on v7x too

    kernel = functools.partial(_unpool_kernel, mode=mode)
    out = pl.pallas_call(
        kernel,
        out_shape=jax.ShapeDtypeStruct((R_pad, N_pad), x.dtype),
        grid=grid,
        in_specs=[
            pl.BlockSpec((TILE_R, TILE_K), lambda r, n, k: (r, k)),
            pl.BlockSpec((n_sel, TILE_K, TILE_N), lambda r, n, k: (0, k, n)),
        ],
        out_specs=pl.BlockSpec((TILE_R, TILE_N), lambda r, n, k: (r, n)),
        scratch_shapes=[pltpu.VMEM((n_sel, TILE_R, TILE_N), jnp.float32)],
        compiler_params=pltpu.CompilerParams(
            dimension_semantics=("parallel", "parallel", "arbitrary"),
            vmem_limit_bytes=vmem_limit,
        ),
    )(x2, w)

    return out[:R, :N].reshape(*lead, N)


# ---------------------- deterministic index construction --------------------

def get_expansion_index(size, kernel_size, key):
    """Mimics SO3SpatialUnpool.get_expansion_index with a synthetic table.

    size = (ns, nalpha); ns = 10 * 4**lvl_in + 2 input spatial vertices.
    """
    ns, nalpha = size
    lvl_in = int(math.log((ns - 2) / 10) / math.log(4))
    lvl_out = lvl_in + int(math.log(kernel_size) / math.log(2))
    if lvl_out - lvl_in > 1:
        raise NotImplementedError
    v_in = ns
    v_out = 10 * 4 ** lvl_out + 2

    # TODO(synk): the real table is loaded from 's2_upsampling/expansion_lvl*.pt';
    # here we synthesize a deterministic table with identical shape/semantics.
    self_idx = jnp.arange(v_in, dtype=jnp.int32)
    base_self = jnp.stack([self_idx, self_idx], axis=1)                 # (v_in, 2)
    base_new = jax.random.randint(key, (v_out - v_in, 2), 0, v_in, dtype=jnp.int32)
    base = jnp.concatenate([base_self, base_new], axis=0)               # (v_out, 2)

    offs = (jnp.arange(nalpha, dtype=jnp.int32) * ns)[:, None, None]    # (nalpha,1,1)
    return (base[None, :, :] + offs).reshape(-1, 2)                     # (nalpha*v_out, 2)


# ------------------------------ pure-JAX ref ---------------------------------

def ref_unpool(x, index, expansion):
    g = x[..., index]                    # (..., N, 2)
    if expansion == "max":
        return g.max(-1)
    return g.mean(-1)


# --------------------------------- main --------------------------------------

if __name__ == "__main__":
    key = jax.random.PRNGKey(0)
    k_idx, k_x, k_rand = jax.random.split(key, 3)

    size = (12, 6)        # (ns, nalpha): lvl_in = 0 icosahedron, 6 alpha samples
    kernel_size = 2       # lvl_out = 1 -> V_out = 42 per alpha
    index = get_expansion_index(size, kernel_size, k_idx)   # (6*42, 2) = (252, 2)

    B, C = 2, 4
    V_in = size[1] * size[0]                                 # 72
    x = jax.random.normal(k_x, (B, C, V_in), dtype=jnp.float32)

    out_avg = so3_spatial_unpool(x, index, expansion="avg", kernel_size=kernel_size)
    out_max = so3_spatial_unpool(x, index, expansion="max", kernel_size=kernel_size)
    out_rnd = so3_spatial_unpool(x, index, expansion="rand", kernel_size=kernel_size,
                                 key=k_rand)
    jax.block_until_ready((out_avg, out_max, out_rnd))

    ref_avg = ref_unpool(x, index, "avg")
    ref_max = ref_unpool(x, index, "max")
    # 'rand' reference: same key -> same per-column selection as inside the wrapper
    k_sel = jax.random.randint(k_rand, (index.shape[0],), 0, 2)
    sel = jnp.take_along_axis(index.astype(jnp.int32), k_sel[:, None], axis=1)[:, 0]
    ref_rnd = x[..., sel]

    N_out = index.shape[0]
    assert out_avg.shape == (B, C, N_out)
    np.testing.assert_allclose(np.asarray(out_avg), np.asarray(ref_avg),
                               atol=2e-5, rtol=2e-5)
    np.testing.assert_allclose(np.asarray(out_max), np.asarray(ref_max),
                               atol=2e-5, rtol=2e-5)
    np.testing.assert_allclose(np.asarray(out_rnd), np.asarray(ref_rnd),
                               atol=2e-5, rtol=2e-5)

    # shortcut branch (kernel_size == 1) returns the input unchanged
    np.testing.assert_allclose(
        np.asarray(so3_spatial_unpool(x, index, expansion="avg", kernel_size=1)),
        np.asarray(x))

    print("KERNEL_OK")
</pallas_src>

<mosaic_0001>
module attributes {stable_mosaic.version = 11 : i64} {
  func.func @_unpool_kernel(%arg0: i32, %arg1: i32, %arg2: i32, %arg3: memref<8x72xf32, #tpu.memory_space<vmem>>, %arg4: memref<1x72x128xf32, #tpu.memory_space<vmem>>, %arg5: memref<8x128xf32, #tpu.memory_space<vmem>>, %arg6: memref<1x8x128xf32, #tpu.memory_space<vmem>>) attributes {dimension_semantics = [#tpu.dimension_semantics<parallel>, #tpu.dimension_semantics<parallel>, #tpu.dimension_semantics<arbitrary>], iteration_bounds = array<i64: 1, 2, 1>, scalar_prefetch = 0 : i64, scratch_operands = 1 : i64, tpu.core_type = #tpu.core_type<tc>, window_params = [{transform_indices = @transform_0, window_bounds = array<i64: 8, 72>}, {transform_indices = @transform_1, window_bounds = array<i64: 1, 72, 128>}, {transform_indices = @transform_2, window_bounds = array<i64: 8, 128>}]} {
    %c0_i32 = arith.constant 0 : i32
    %0 = arith.cmpi eq, %arg2, %c0_i32 : i32
    %1 = arith.extui %0 : i1 to i32
    %c0_i32_0 = arith.constant 0 : i32
    %2 = arith.cmpi ne, %1, %c0_i32_0 : i32
    scf.if %2 {
      %cst_13 = arith.constant 0.000000e+00 : f32
      %16 = vector.broadcast %cst_13 : f32 to vector<1x8x128xf32>
      %c0_14 = arith.constant 0 : index
      %c0_15 = arith.constant 0 : index
      %c0_16 = arith.constant 0 : index
      %17 = vector.load %arg6[%c0_14, %c0_15, %c0_16] : memref<1x8x128xf32, #tpu.memory_space<vmem>>, vector<1x8x128xf32>
      tpu.vector_store %arg6[%c0_14, %c0_15, %c0_16], %16 {strides = array<i32>} : memref<1x8x128xf32, #tpu.memory_space<vmem>>, vector<1x8x128xf32>,
    } else {
    }
    %c0 = arith.constant 0 : index
    %c0_1 = arith.constant 0 : index
    %3 = vector.load %arg3[%c0, %c0_1] : memref<8x72xf32, #tpu.memory_space<vmem>>, vector<8x72xf32>
    %c0_2 = arith.constant 0 : index
    %c0_3 = arith.constant 0 : index
    %c0_4 = arith.constant 0 : index
    %4 = vector.load %arg6[%c0_2, %c0_3, %c0_4] : memref<1x8x128xf32, #tpu.memory_space<vmem>>, vector<1x8x128xf32>
    %5 = vector.shape_cast %4 : vector<1x8x128xf32> to vector<8x128xf32>
    %c0_5 = arith.constant 0 : index
    %c0_6 = arith.constant 0 : index
    %c0_7 = arith.constant 0 : index
    %6 = vector.load %arg4[%c0_5, %c0_6, %c0_7] : memref<1x72x128xf32, #tpu.memory_space<vmem>>, vector<1x72x128xf32>
    %7 = vector.shape_cast %6 : vector<1x72x128xf32> to vector<72x128xf32>
    %cst = arith.constant dense<0.000000e+00> : vector<8x128xf32>
    %8 = tpu.matmul %3, %7, %cst {dimension_numbers = #tpu.dot_dimension_numbers<[1], [0], [0], [1], [0, 0, 1, 1], [], []>} : vector<8x72xf32>, vector<72x128xf32>, vector<8x128xf32> -> vector<8x128xf32>
    %9 = arith.addf %5, %8 : vector<8x128xf32>
    %c0_8 = arith.constant 0 : index
    %c0_9 = arith.constant 0 : index
    %c0_10 = arith.constant 0 : index
    %10 = vector.load %arg6[%c0_8, %c0_9, %c0_10] : memref<1x8x128xf32, #tpu.memory_space<vmem>>, vector<1x8x128xf32>
    %11 = vector.shape_cast %10 : vector<1x8x128xf32> to vector<8x128xf32>
    %12 = vector.shape_cast %9 : vector<8x128xf32> to vector<1x8x128xf32>
    tpu.vector_store %arg6[%c0_8, %c0_9, %c0_10], %12 {strides = array<i32>} : memref<1x8x128xf32, #tpu.memory_space<vmem>>, vector<1x8x128xf32>,
    %c0_i32_11 = arith.constant 0 : i32
    %13 = arith.cmpi eq, %arg2, %c0_i32_11 : i32
    %14 = arith.extui %13 : i1 to i32
    %c0_i32_12 = arith.constant 0 : i32
    %15 = arith.cmpi ne, %14, %c0_i32_12 : i32
    scf.if %15 {
      %c0_13 = arith.constant 0 : index
      %c0_14 = arith.constant 0 : index
      %c0_15 = arith.constant 0 : index
      %16 = vector.load %arg6[%c0_13, %c0_14, %c0_15] : memref<1x8x128xf32, #tpu.memory_space<vmem>>, vector<1x8x128xf32>
      %17 = vector.shape_cast %16 : vector<1x8x128xf32> to vector<8x128xf32>
      %c0_16 = arith.constant 0 : index
      %c0_17 = arith.constant 0 : index
      %18 = vector.load %arg5[%c0_16, %c0_17] : memref<8x128xf32, #tpu.memory_space<vmem>>, vector<8x128xf32>
      tpu.vector_store %arg5[%c0_16, %c0_17], %17 {strides = array<i32>} : memref<8x128xf32, #tpu.memory_space<vmem>>, vector<8x128xf32>,
    } else {
    }
    return
  }
  func.func @transform_0(%arg0: i32, %arg1: i32, %arg2: i32) -> (i32, i32) {
    %c0_i32 = arith.constant 0 : i32
    return %arg0, %arg2 : i32, i32
  }
  func.func @transform_1(%arg0: i32, %arg1: i32, %arg2: i32) -> (i32, i32, i32) {
    %c0_i32 = arith.constant 0 : i32
    %c0_i32_0 = arith.constant 0 : i32
    return %c0_i32, %arg2, %arg1 : i32, i32, i32
  }
  func.func @transform_2(%arg0: i32, %arg1: i32, %arg2: i32) -> (i32, i32) {
    %c0_i32 = arith.constant 0 : i32
    return %arg0, %arg1 : i32, i32
  }
}

</mosaic_0001>

<bundles_post_ra>
// kernel: tpu_custom_call.1
= control target key start
LH: loop header
LB: loop body
LE: loop exit
PB: predicated region body
PF: predicated region fallthrough
CT: control target
= control target key end

     0   :  { %7 = vsyncpa [#allocation4], 0  ;;  %s888_s0 = inlined_call_operand.hbm [shape: f32[8,72], index: 0, kind: input, shape index: {}]   ;;  %s889_s1 = inlined_call_operand.hbm [shape: f32[1,72,256], index: 1, kind: input, shape index: {}]   ;;  %s890_s2 = inlined_call_operand.hbm [shape: f32[8,256], index: 2, kind: output, shape index: {}]  }
   0x1   :  { %8 = vsyncpa [#allocation7], 0 }
   0x2   :  { %10 = vsyncpa [#allocation7 + $0x1], 0 }
   0x3   :  { %11 = vsyncpa [#allocation5], 0 }
   0x4   :  { %13 = vsyncpa [#allocation5 + $0x1], 0  ;;  %s712_s9 = smov 0   ;;  %s714_s10 = smov 0  }
   0x5   :  { %s716_s11 = smov 0   ;;  %s718_s12 = smov 0  }
   0x6   :  { %s720_s13 = smov 0   ;;  %s722_s14 = smov 0  }
   0x7 LB: > { %s424_s15 = sadd.s32 4294967295, %s687_s14   ;;  %s425_s16 = sadd.s32 4294967294, %s687_s14   ;;  %s687_s14 = sphi %s722_s14, %s19_s14   ;;  %s683_s13 = sphi %s720_s13, %s909_s13   ;;  %s679_s12 = sphi %s718_s12, %s908_s12   ;;  %s675_s11 = sphi %s716_s11, %s907_s11   ;;  %s671_s10 = sphi %s714_s10, %s906_s10   ;;  %s667_s9 = sphi %s712_s9, %s905_s9  }
   0x8   : > { %s75_s17 = sadd.s32 1, %s675_s11  ;;  %p82_p0 = scmp.ne.s32.totalorder %s675_s11, %s671_s10 }
   0x9   : > { %p83_p1 = scmp.eq.s32.totalorder %s687_s14, 0  ;;  %p88_p2 = scmp.ne.s32.totalorder %s671_s10, %s667_s9 }
   0xa   : > { %p750_p3 = scmp.eq.s32.totalorder %s424_s15, 0  ;;  %p114_p4 = scmp.eq.s32.totalorder %s424_s15, 1 }
   0xb   : > { %p754_p5 = por %p83_p1, %p82_p0  ;;  %p120_p6 = scmp.eq.s32.totalorder %s425_s16, 1 }
   0xc   : > { %p760_p7 = por %p750_p3, %p88_p2  ;;  %p764_p8 = por %p114_p4, %p82_p0 }
   0xd   : > { %p768_p9 = por %p120_p6, %p88_p2  ;;  %p426_p10 = scmp.ge.s32.totalorder %s687_s14, 1 }
   0xe   : > { %s895_s20 = scalar_select %p760_p7, 1, 0 }
   0xf   : > { %s896_s21 = scalar_select %p764_p8, 1, 0 }
  0x10   : > { %s897_s22 = scalar_select %p768_p9, 1, 0 }
  0x11   : > { %p127_p11 = scmp.lt.s32.totalorder %s687_s14, 3  ;;  %s689_s24 = smov [#allocation3]  }
  0x12   : > { %s143_s25 = sshll.u32 %s689_s24, 4  ;;  %p492_p1 = scmp.lt.s32.totalorder %s687_s14, 2  ;;  %s144_s25 = int_to_ptr.vmem [resolvable:$true] %s143_s25 }
  0x13   : > { %p775_p13 = pnand %p426_p10, %p127_p11  ;;  %s34_s28 = sadd.s32 1, %s683_s13 }
  0x14   : > { %p784_p4 = pnand %p492_p1, %p754_p5  ;;  %p36_p6 = scmp.ge.s32.totalorder %s34_s28, 2 }
  0x15   : > { %p479_p0 = pneg %p775_p13  ;;  %s154_s29 = sand.u32 1, %s675_s11  }
  0x16   : > { %s560_s30 = scalar_lea.vmem %s144_s25, 128  ;;  %p568_p8 = scmp.lt.s32.totalorder %s144_s25, %s144_s25 }
  0x17   : > { %p790_p2 = pnand %p479_p0, %p750_p3  ;;  %p561_p11 = scmp.ne.s32.totalorder %s144_s25, %s560_s30 }
  0x18   : > { %p569_p5 = scmp.lt.s32.totalorder %s560_s30, %s560_s30 }
  0x19   : > { %p551_p10 = pneg %p790_p2 }
  0x1a   : > { %p570_p1 = por %p569_p5, %p568_p8 }
  0x1b   : > { %p563_p12 = pnand %p561_p11, %p551_p10 }
  0x1d   : > { %p564_p9 = pneg %p563_p12 }
  0x1f   : > { %p571_p7 = pnand %p570_p1, %p564_p9 }
  0x21   : > { %574 = shalt.err (!%p571_p7)
}
  0x22   : > { %482 = dma.hbm_to_vmem [thread:$0]  (!%p790_p2), %s888_s0, 128, %s144_s25, [#allocation4]  }
  0x23   : > { %s911_s28 = smov (%p36_p6, %s34_s28), 0  ;;  %s469_s5 = smul.u32 72, %s154_s29 }
  0x24   : > { %s71_s6 = ssub.s32 %s683_s13, %s911_s28  ;;  %s429_s7 = sshll.u32 %s683_s13, 7 }
  0x25   : > { %p73_p8 = scmp.eq.s32.totalorder %s71_s6, 0  ;;  %s166_s16 = scalar_lea.hbm %s889_s1, %s429_s7 }
  0x26   : > { %s158_s19 = scalar_lea.vmem [#allocation6], %s469_s5  ;;  %s155_s30 = scalar_lea.sflag [#allocation7], %s154_s29 }
  0x27   : > { %s167_s24 = sshll.u32 %s158_s19, 4  ;;  %p577_p7 = pneg %p784_p4  ;;  %s168_s24 = int_to_ptr.vmem [resolvable:$true] %s167_s24 }
  0x28   : > { %s814_s27 = scalar_select %p73_p8, %s675_s11, %s75_s17  }
  0x29   : > { %s588_s25 = scalar_lea.vmem %s168_s24, 1152  ;;  %s690_s3 = smov [#allocation6]  }
  0x2a   : > { %p589_p9 = scmp.ne.s32.totalorder %s168_s24, %s588_s25  ;;  %s593_s4 = sshll.u32 %s690_s3, 4  ;;  %s594_s4 = int_to_ptr.vmem [resolvable:$false] %s593_s4 }
  0x2b   : > { %s595_s6 = scalar_lea.vmem %s594_s4, 2304  ;;  %p596_p2 = scmp.lt.s32.totalorder %s168_s24, %s594_s4 }
  0x2c   : > { %p591_p12 = pnand %p589_p9, %p577_p7  ;;  %p597_p6 = scmp.lt.s32.totalorder %s595_s6, %s588_s25 }
  0x2e   : > { %p592_p0 = pneg %p591_p12  ;;  %p598_p10 = por %p597_p6, %p596_p2 }
  0x30   : > { %p599_p11 = pnand %p598_p10, %p592_p0 }
  0x32   : > { %602 = shalt.err (!%p599_p11)
}
  0x33   : > { %s691_s5 = smov 256   ;;  %s692_s17 = smov 128  }
  0x34   : > { %s693_s7 = smov 8   ;;  %179 = sbr.rel (%p775_p13) target bundleno = 289 (0x121), region = 28 }
  0x35   : > { %486 = dma.hbm_to_vmem [thread:$0]  (!%p784_p4), %s166_s16, 1152, %s168_s24, %s155_s30, %s691_s5, %s692_s17, %s693_s7  }
  0x39   : > { %654 = dma.done.wait (%p750_p3), [#allocation4], 128  }
  0x3a   : > { %656 = vsyncadd (%p750_p3), [#allocation4], 4294967168  ;;  %s827_s29 = sand.u32 1, %s671_s10   ;;  %p901_p5 = scmp.ne.s32.totalorder %s895_s20, 0 }
  0x3b   : > { %s470_s8 = smul.u32 72, %s827_s29  ;;  %s186_s15 = scalar_lea.sflag [#allocation7], %s827_s29 }
  0x3d   : > { %s189_s19 = scalar_lea.vmem [#allocation6], %s470_s8 }
  0x3e   : > { %658 = dma.done.wait (%p901_p5), %s186_s15, 1152  }
  0x3f   : > { %660 = vsyncadd (%p901_p5), %s186_s15, 4294966144  ;;  %v694_v0 = vmov 0.0   ;;  %vm695_vm0 = vmmov 0   ;;  %v226_v1 = vld [vmem:[%s189_s19 + $0x40] sm:$0xff]  ;;  %v225_v2 = vld [vmem:[%s189_s19 + $0x38] sm:$0xff]  ;;  %vm227_vm1 = vcmask 588800  }
  0x40   : > { %448 = vmatprep.subr.mxu0 %v694_v0  ;;  %466 = vmatprep.mubr.msk.f32.mxu0 %vm695_vm0, %v694_v0  ;;  %v224_v3 = vld [vmem:[%s189_s19 + $0x30] sm:$0xff]  ;;  %v223_v4 = vld [vmem:[%s189_s19 + $0x28] sm:$0xff]  ;;  %v222_v5 = vld [vmem:[%s189_s19 + $0x20] sm:$0xff]  ;;  %s432_s18 = sshll.u32 %s827_s29, 3  ;;  %s435_s26 = sshll.u32 %s679_s12, 7 }
  0x41   : > { %449 = vmatpush3.msra.mxu0 %v226_v1  ;;  %v221_v6 = vld [vmem:[%s189_s19 + $0x18] sm:$0xff]  ;;  %v220_v7 = vld [vmem:[%s189_s19 + $0x10] sm:$0xff]  ;;  %v219_v8 = vld [vmem:[%s189_s19 + $0x8] sm:$0xff]  ;;  %s209_s20 = scalar_lea.vmem [#allocation8], %s432_s18  ;;  %s842_s30 = scalar_lea.hbm %s890_s2, %s435_s26 }
  0x42   : > { %450 = vmatprep.subr.mxu0 %v694_v0  ;;  %v218_v9 = vld [vmem:[%s189_s19] sm:$0xff]  ;;  %v216_v10 = vld [vmem:[#allocation3] sm:$0xff]  ;;  %s324_s23 = sshll.u32 %s209_s20, 4  ;;  %s309_s25 = scalar_lea.sflag [#allocation5], %s827_s29  ;;  %s837_s23 = int_to_ptr.vmem [resolvable:$true] %s324_s23 }
  0x43   : > { %451 = vmatpush3.msra.mxu0 %v225_v2  ;;  %s603_s3 = scalar_lea.vmem %s837_s23, 128  ;;  %p902_p13 = scmp.ne.s32.totalorder %s896_s21, 0 }
  0x44   : > { %452 = vmatprep.subr.mxu0 %v694_v0  ;;  %p604_p3 = scmp.ne.s32.totalorder %s837_s23, %s603_s3  ;;  %s696_s12 = smov [#allocation8]  }
  0x45   : > { %453 = vmatpush3.msra.mxu0 %v224_v3  ;;  %s607_s4 = sshll.u32 %s696_s12, 4  ;;  %s608_s4 = int_to_ptr.vmem [resolvable:$false] %s607_s4 }
  0x46   : > { %454 = vmatprep.subr.mxu0 %v694_v0  ;;  %p605_p4 = pnand %p604_p3, %p902_p13  ;;  %s609_s6 = scalar_lea.vmem %s608_s4, 256 }
  0x47   : > { %455 = vmatpush3.msra.mxu0 %v223_v4  ;;  %p610_p8 = scmp.lt.s32.totalorder %s837_s23, %s608_s4  ;;  %p611_p7 = scmp.lt.s32.totalorder %s609_s6, %s603_s3 }
  0x48   : > { %456 = vmatprep.subr.mxu0 %v694_v0  ;;  %p606_p1 = pneg %p605_p4 }
  0x49   : > { %457 = vmatpush3.msra.mxu0 %v222_v5  ;;  %p612_p9 = por %p611_p7, %p610_p8 }
  0x4a   : > { %458 = vmatprep.subr.mxu0 %v694_v0 }
  0x4b   : > { %459 = vmatpush3.msra.mxu0 %v221_v6  ;;  %p613_p12 = pnand %p612_p9, %p606_p1 }
  0x4c   : > { %460 = vmatprep.subr.mxu0 %v694_v0 }
  0x4d   : > { %461 = vmatpush3.msra.mxu0 %v220_v7 }
  0x4e   : > { %462 = vmatprep.subr.mxu0 %v694_v0 }
  0x4f   : > { %463 = vmatpush3.msra.mxu0 %v219_v8 }
  0x50   : > { %464 = vmatprep.subr.mxu0 %v694_v0 }
  0x51   : > { %465 = vmatpush3.msra.mxu0 %v218_v9 }
  0x52   : > { %467 = vmatmul.mubr.msk.f32.vlgmr.msra.gmra.mxu0 %vm227_vm1, %v216_v10 }
 0x112   : > { %v297_v11 = vpop.f32.mrf.mxu0 }
 0x113   : > { %307 = vst [vmem:[%s209_s20] sm:$0xff] %v297_v11 }
 0x114   : > { %v468_v12 = vpop.f32.mrf.mxu0 }
 0x115   : > { %616 = shalt.err (!%p613_p12)
}
 0x116   : > { %s617_s5 = scalar_lea.hbm %s842_s30, 128  ;;  %s621_s29 = scalar_lea.hbm %s890_s2, 256 }
 0x117   : > { %p618_p0 = scmp.ne.s32.totalorder %s842_s30, %s617_s5  ;;  %p622_p10 = scmp.lt.s32.totalorder %s842_s30, %s890_s2 }
 0x118   : > { %p623_p11 = scmp.lt.s32.totalorder %s621_s29, %s617_s5 }
 0x119   : > { %p619_p2 = pnand %p618_p0, %p902_p13 }
 0x11a   : > { %p624_p5 = por %p623_p11, %p622_p10 }
 0x11b   : > { %p620_p6 = pneg %p619_p2 }
 0x11d   : > { %p625_p3 = pnand %p624_p5, %p620_p6 }
 0x11f   : > { %628 = shalt.err (!%p625_p3)
}
 0x120   : > { %477 = dma.vmem_to_hbm [thread:$0]  (%p902_p13), %s837_s23, 128, %s842_s30, %s309_s25  }
 0x121 PF: > { %s336_s19 = sand.u32 1, %s667_s9   ;;  %p903_p4 = scmp.ne.s32.totalorder %s897_s22, 0 }
 0x122   : > { %p904_p1 = scmp.ge.s32.totalorder %s687_s14, 2  ;;  %s337_s18 = scalar_lea.sflag [#allocation5], %s336_s19 }
 0x124   : > { %p488_p8 = pnand %p904_p1, %p903_p4 }
 0x126   : > { %p489_p7 = pneg %p488_p8 }
 0x128   : > { %662 = dma.done.wait (%p489_p7), %s337_s18, 128  }
 0x129   : > { %664 = vsyncadd (%p489_p7), %s337_s18, 4294967168  ;;  %s19_s14 = sadd.s32 1, %s687_s14   ;;  %s905_s9 = smov %s671_s10 }
 0x12a   : > { %p16_p9 = scmp.ge.s32.totalorder %s19_s14, 4   ;;  %s906_s10 = smov %s675_s11 }
 0x12b   : > { %s907_s11 = smov %s814_s27  ;;  %s908_s12 = smov %s683_s13 }
 0x12c   : > { %s909_s13 = smov %s911_s28  ;;  %18 = sbr.rel (!%p16_p9) target bundleno = 7 (0x7), region = 87 }
 0x131   :  { %342 = vsyncpa [#allocation4], 1 }
 0x132   :  { %344 = vsyncpa [#allocation4 + $0x1], 1 }
 0x133   :  { %345 = vsyncpa [#allocation7], 1 }
 0x134   :  { %347 = vsyncpa [#allocation7 + $0x1], 1 }
 0x135   :  { %348 = vsyncpa [#allocation5], 1 }
 0x136   :  { %350 = vsyncpa [#allocation5 + $0x1], 1 }

</bundles_post_ra>
